<compile_context>
chip_gen: v7x
topology: tpu7x:2x2x1
jax: 0.10.0
libtpu: 0.0.40
codegen_flags: <defaults>
</compile_context>

<pallas_src>
from typing import NamedTuple

import numpy as np
import jax
import jax.numpy as jnp
from jax.experimental import pallas as pl
from jax.experimental.pallas import tpu as pltpu


# ----------------------------- Pallas kernel --------------------------------

def fc_tanh_kernel(x_ref, w_ref, b_ref, o_ref, acc_ref):
    """One (tm, tn) output tile of tanh(x @ W + b), accumulated over K panels.

    x_ref   : (tm, tk)  activation panel
    w_ref   : (tk, tn)  weight panel (lane-dense tn)
    b_ref   : (1,  tn)  bias tile
    o_ref   : (tm, tn)  output tile
    acc_ref : (tm, tn)  f32 VMEM accumulator scratch
    """
    k = pl.program_id(2)

    @pl.when(k == 0)
    def _():
        acc_ref[...] = jnp.zeros_like(acc_ref)

    acc_ref[...] += jnp.dot(x_ref[...], w_ref[...],
                            preferred_element_type=jnp.float32)

    @pl.when(k == pl.num_programs(2) - 1)
    def _():
        # bias add on the VPU, tanh on the EUP -> both ride free slots
        o_ref[...] = jnp.tanh(acc_ref[...] + b_ref[...]).astype(o_ref.dtype)


# ------------------------------ tiling plan ----------------------------------

class _Plan(NamedTuple):
    tm: int
    tn: int
    tk: int
    Mp: int
    Kp: int
    Np: int
    vmem_limit: int


def _ceil_to(x, m):
    return (x + m - 1) // m * m


def _vmem_capacity_bytes():
    try:
        return int(pltpu.get_tpu_info().vmem_capacity_bytes)
    except Exception:
        return 64 * 1024 * 1024  # conservative fallback (v7x per-TensorCore)


def plan_fc_block(M, K, N, itemsize=4):
    """Pick (tm, tn, tk) from the per-generation VMEM budget."""
    vmem_cap = _vmem_capacity_bytes()
    budget = (vmem_cap * 3) // 8                     # working-set ceiling w/ headroom
    vmem_limit = max(vmem_cap // 2, 32 * 1024 * 1024)

    # Lane-dense N tile: largest candidate (<=1024) dividing the padded N.
    Np128 = _ceil_to(N, 128)
    n_cands = ([Np128] if Np128 <= 1024 else []) + [
        c for c in (1024, 768, 640, 512, 384, 256, 128)
        if c < Np128 and Np128 % c == 0
    ]
    seen = set()
    n_cands = [c for c in n_cands if not (c in seen or seen.add(c))]
    ni = 0
    tn = n_cands[ni]

    # Contraction: full K when moderate, otherwise zero-padded 512-wide panels.
    tk = K if K <= 2048 else 512

    # Batch: a single tile covering the whole (8-aligned) batch when possible,
    # so the weight streams from HBM exactly once; capped at 512 rows.
    Mp8 = _ceil_to(max(M, 1), 8)
    tm = min(Mp8, 512)

    def working_set(tm_, tn_, tk_):
        # double-buffered x/w/b/out tiles + f32 accumulator scratch
        return (2 * tm_ * tk_ + 2 * tk_ * tn_ + 2 * tn_ + 2 * tm_ * tn_) * itemsize \
               + tm_ * tn_ * 4

    while working_set(tm, tn, tk) > budget:
        if tm > 256:
            tm = _ceil_to(tm // 2, 8)
        elif ni + 1 < len(n_cands):
            ni += 1
            tn = n_cands[ni]
        elif tm > 8:
            tm = max(8, _ceil_to(tm // 2, 8))
        elif tk == K and K > 512:
            tk = 512                                  # fall back to K-tiling
        elif tk > 128:
            tk = max(128, tk // 2)
        else:
            break

    Mp = _ceil_to(max(M, 1), tm)
    Np = _ceil_to(N, tn)

    # 2-TensorCore chips (v7x): keep >=2 tiles on a parallel axis when possible.
    if (Mp // tm) * (Np // tn) == 1:
        if Np // 128 >= 2:
            tn = max(128, (Np // 2) // 128 * 128)
            Np = _ceil_to(N, tn)
        elif Mp // 8 >= 2:
            tm = max(8, (Mp // 2) // 8 * 8)
            Mp = _ceil_to(max(M, 1), tm)

    Kp = K if tk == K else _ceil_to(K, tk)
    return _Plan(tm, tn, tk, Mp, Kp, Np, vmem_limit)


# ------------------------------ JAX wrapper ----------------------------------

def prepare_params(w, b, plan):
    """Pad weight/bias ONCE (hoisted out of the per-forward path)."""
    K, N = w.shape
    wp = jnp.pad(w, ((0, plan.Kp - K), (0, plan.Np - N)))
    bp = jnp.pad(b, (0, plan.Np - N)).reshape(1, plan.Np)
    return wp, bp


def fc_block_apply(x, wp, bp, out_size, plan):
    """FCBlock.forward with pre-padded params: y = tanh(x @ W + b)."""
    M, K = x.shape
    tm, tn, tk = plan.tm, plan.tn, plan.tk
    Mp, Kp, Np = plan.Mp, plan.Kp, plan.Np

    xp = x if (Mp, Kp) == (M, K) else jnp.pad(x, ((0, Mp - M), (0, Kp - K)))

    out = pl.pallas_call(
        fc_tanh_kernel,
        out_shape=jax.ShapeDtypeStruct((Mp, Np), x.dtype),
        grid=(Mp // tm, Np // tn, Kp // tk),
        in_specs=[
            pl.BlockSpec((tm, tk), lambda i, j, k: (i, k)),
            # TODO(synk): if profiling shows exposed weight DMA at large K, add
            # pipeline_mode=pl.Buffered(3) here and re-check the VMEM budget.
            pl.BlockSpec((tk, tn), lambda i, j, k: (k, j)),
            pl.BlockSpec((1, tn), lambda i, j, k: (0, j)),
        ],
        out_specs=pl.BlockSpec((tm, tn), lambda i, j, k: (i, j)),
        scratch_shapes=[pltpu.VMEM((tm, tn), jnp.float32)],
        compiler_params=pltpu.CompilerParams(
            dimension_semantics=("parallel", "parallel", "arbitrary"),
            vmem_limit_bytes=plan.vmem_limit),
    )(xp, wp, bp)

    return out[:M, :out_size]


def fc_block(x, w, b):
    """One-shot convenience wrapper (plans + pads + runs)."""
    plan = plan_fc_block(x.shape[0], x.shape[1], w.shape[1])
    wp, bp = prepare_params(w, b, plan)
    return fc_block_apply(x, wp, bp, w.shape[1], plan)


# ------------------------- params & pure-JAX reference -----------------------

def init_params(key, in_size, out_size):
    """PyTorch nn.Linear-style init, with the module's extra sqrt(2) weight scale."""
    kw, kb = jax.random.split(key)
    bound = 1.0 / np.sqrt(in_size)
    # torch Linear.weight is (out, in); store transposed as (in, out) for matmul.
    w = jax.random.uniform(kw, (in_size, out_size), jnp.float32, -bound, bound)
    w = w * np.sqrt(2.0)
    b = jax.random.uniform(kb, (out_size,), jnp.float32, -bound, bound)
    return w, b


def fc_block_ref(x, w, b):
    return jnp.tanh(x @ w + b)


# ----------------------------------- main ------------------------------------

if __name__ == "__main__":
    batch, in_size, out_size = 8, 16, 32

    key = jax.random.PRNGKey(0)
    kx, kp = jax.random.split(key)
    x = jax.random.normal(kx, (batch, in_size), jnp.float32)
    w, b = init_params(kp, in_size, out_size)

    # Plan + pad the parameters once; reuse them for every forward call.
    plan = plan_fc_block(batch, in_size, out_size)
    wp, bp = prepare_params(w, b, plan)

    out = jax.block_until_ready(fc_block_apply(x, wp, bp, out_size, plan))
    assert out.shape == (batch, out_size), out.shape

    ref = jax.block_until_ready(fc_block_ref(x, w, b))
    if not np.allclose(np.asarray(out), np.asarray(ref), atol=1e-5, rtol=1e-5):
        raise AssertionError("Pallas FCBlock mismatch vs JAX reference")

    print("KERNEL_OK")
</pallas_src>

<mosaic_0001>
module attributes {stable_mosaic.version = 11 : i64} {
  func.func @fc_tanh_kernel(%arg0: i32, %arg1: i32, %arg2: i32, %arg3: memref<8x16xf32, #tpu.memory_space<vmem>>, %arg4: memref<16x128xf32, #tpu.memory_space<vmem>>, %arg5: memref<1x128xf32, #tpu.memory_space<vmem>>, %arg6: memref<8x128xf32, #tpu.memory_space<vmem>>, %arg7: memref<8x128xf32, #tpu.memory_space<vmem>>) attributes {dimension_semantics = [#tpu.dimension_semantics<parallel>, #tpu.dimension_semantics<parallel>, #tpu.dimension_semantics<arbitrary>], iteration_bounds = array<i64: 1, 1, 1>, scalar_prefetch = 0 : i64, scratch_operands = 1 : i64, tpu.core_type = #tpu.core_type<tc>, window_params = [{transform_indices = @transform_0, window_bounds = array<i64: 8, 16>}, {transform_indices = @transform_1, window_bounds = array<i64: 16, 128>}, {transform_indices = @transform_2, window_bounds = array<i64: 1, 128>}, {transform_indices = @transform_3, window_bounds = array<i64: 8, 128>}]} {
    %c0_i32 = arith.constant 0 : i32
    %0 = arith.cmpi eq, %arg2, %c0_i32 : i32
    %1 = arith.extui %0 : i1 to i32
    %c0_i32_0 = arith.constant 0 : i32
    %2 = arith.cmpi ne, %1, %c0_i32_0 : i32
    scf.if %2 {
      %cst_10 = arith.constant 0.000000e+00 : f32
      %12 = vector.broadcast %cst_10 : f32 to vector<8x128xf32>
      %c0_11 = arith.constant 0 : index
      %c0_12 = arith.constant 0 : index
      %13 = vector.load %arg7[%c0_11, %c0_12] : memref<8x128xf32, #tpu.memory_space<vmem>>, vector<8x128xf32>
      tpu.vector_store %arg7[%c0_11, %c0_12], %12 {strides = array<i32>} : memref<8x128xf32, #tpu.memory_space<vmem>>, vector<8x128xf32>,
    } else {
    }
    %c0 = arith.constant 0 : index
    %c0_1 = arith.constant 0 : index
    %3 = vector.load %arg7[%c0, %c0_1] : memref<8x128xf32, #tpu.memory_space<vmem>>, vector<8x128xf32>
    %c0_2 = arith.constant 0 : index
    %c0_3 = arith.constant 0 : index
    %4 = vector.load %arg3[%c0_2, %c0_3] : memref<8x16xf32, #tpu.memory_space<vmem>>, vector<8x16xf32>
    %c0_4 = arith.constant 0 : index
    %c0_5 = arith.constant 0 : index
    %5 = vector.load %arg4[%c0_4, %c0_5] : memref<16x128xf32, #tpu.memory_space<vmem>>, vector<16x128xf32>
    %cst = arith.constant dense<0.000000e+00> : vector<8x128xf32>
    %6 = tpu.matmul %4, %5, %cst {dimension_numbers = #tpu.dot_dimension_numbers<[1], [0], [0], [1], [0, 0, 1, 1], [], []>} : vector<8x16xf32>, vector<16x128xf32>, vector<8x128xf32> -> vector<8x128xf32>
    %7 = arith.addf %3, %6 : vector<8x128xf32>
    %c0_6 = arith.constant 0 : index
    %c0_7 = arith.constant 0 : index
    %8 = vector.load %arg7[%c0_6, %c0_7] : memref<8x128xf32, #tpu.memory_space<vmem>>, vector<8x128xf32>
    tpu.vector_store %arg7[%c0_6, %c0_7], %7 {strides = array<i32>} : memref<8x128xf32, #tpu.memory_space<vmem>>, vector<8x128xf32>,
    %c0_i32_8 = arith.constant 0 : i32
    %9 = arith.cmpi eq, %arg2, %c0_i32_8 : i32
    %10 = arith.extui %9 : i1 to i32
    %c0_i32_9 = arith.constant 0 : i32
    %11 = arith.cmpi ne, %10, %c0_i32_9 : i32
    scf.if %11 {
      %c0_10 = arith.constant 0 : index
      %c0_11 = arith.constant 0 : index
      %12 = vector.load %arg7[%c0_10, %c0_11] : memref<8x128xf32, #tpu.memory_space<vmem>>, vector<8x128xf32>
      %c0_12 = arith.constant 0 : index
      %c0_13 = arith.constant 0 : index
      %13 = vector.load %arg5[%c0_12, %c0_13] : memref<1x128xf32, #tpu.memory_space<vmem>>, vector<1x128xf32>
      %14 = vector.broadcast %13 : vector<1x128xf32> to vector<8x128xf32>
      %15 = arith.addf %12, %14 : vector<8x128xf32>
      %16 = math.tanh %15 : vector<8x128xf32>
      %c0_14 = arith.constant 0 : index
      %c0_15 = arith.constant 0 : index
      %17 = vector.load %arg6[%c0_14, %c0_15] : memref<8x128xf32, #tpu.memory_space<vmem>>, vector<8x128xf32>
      tpu.vector_store %arg6[%c0_14, %c0_15], %16 {strides = array<i32>} : memref<8x128xf32, #tpu.memory_space<vmem>>, vector<8x128xf32>,
    } else {
    }
    return
  }
  func.func @transform_0(%arg0: i32, %arg1: i32, %arg2: i32) -> (i32, i32) {
    %c0_i32 = arith.constant 0 : i32
    return %arg0, %arg2 : i32, i32
  }
  func.func @transform_1(%arg0: i32, %arg1: i32, %arg2: i32) -> (i32, i32) {
    %c0_i32 = arith.constant 0 : i32
    return %arg2, %arg1 : i32, i32
  }
  func.func @transform_2(%arg0: i32, %arg1: i32, %arg2: i32) -> (i32, i32) {
    %c0_i32 = arith.constant 0 : i32
    %c0_i32_0 = arith.constant 0 : i32
    return %c0_i32, %arg1 : i32, i32
  }
  func.func @transform_3(%arg0: i32, %arg1: i32, %arg2: i32) -> (i32, i32) {
    %c0_i32 = arith.constant 0 : i32
    return %arg0, %arg1 : i32, i32
  }
}

</mosaic_0001>

<bundles_post_ra>
// kernel: tpu_custom_call.1
= control target key start
LH: loop header
LB: loop body
LE: loop exit
PB: predicated region body
PF: predicated region fallthrough
CT: control target
= control target key end

     0   :  { %8 = vsyncpa [#allocation4], 0  ;;  %s327_s0 = inlined_call_operand.hbm [shape: f32[8,16], index: 0, kind: input, shape index: {}]   ;;  %s328_s1 = inlined_call_operand.hbm [shape: f32[16,128], index: 1, kind: input, shape index: {}]   ;;  %s329_s2 = inlined_call_operand.vmem [shape: f32[1,128], index: 2, kind: input, shape index: {}]   ;;  %s330_s3 = inlined_call_operand.hbm [shape: f32[8,128], index: 3, kind: output, shape index: {}]  }
   0x1   :  { %9 = vsyncpa [#allocation7], 0 }
   0x2   :  { %10 = vsyncpa [#allocation5], 0  ;;  %s253_s12 = smov [#allocation3]   ;;  %s254_s14 = smov [#allocation6]  }
   0x3   :  { %s17_s13 = sshll.u32 %s253_s12, 4  ;;  %s26_s15 = sshll.u32 %s254_s14, 4  ;;  %s18_s13 = int_to_ptr.vmem [resolvable:$true] %s17_s13  ;;  %s281_s15 = int_to_ptr.vmem [resolvable:$true] %s26_s15 }
   0x4   :  { %s181_s18 = scalar_lea.hbm %s327_s0, 128 }
   0x5   :  { %p182_p0 = scmp.ne.s32.totalorder %s327_s0, %s181_s18  ;;  %p185_p1 = scmp.lt.u32.totalorder %s181_s18, %s327_s0 }
   0x7   :  { %p187_p2 = pnand %p185_p1, %p182_p0 }
   0x9   :  { %190 = shalt.err (!%p187_p2)
}
   0xa   :  { %s191_s23 = scalar_lea.vmem %s18_s13, 128  ;;  %p196_p4 = scmp.lt.s32.totalorder %s18_s13, %s18_s13 }
   0xb   :  { %p192_p3 = scmp.ne.s32.totalorder %s18_s13, %s191_s23  ;;  %p197_p5 = scmp.lt.s32.totalorder %s191_s23, %s191_s23 }
   0xd   :  { %p198_p6 = por %p197_p5, %p196_p4 }
   0xf   :  { %p199_p7 = pnand %p198_p6, %p192_p3 }
  0x11   :  { %202 = shalt.err (!%p199_p7)
}
  0x12   :  { %20 = dma.hbm_to_vmem [thread:$0]  %s327_s0, 128, %s18_s13, [#allocation4]  }
  0x13   :  { %s203_s28 = scalar_lea.hbm %s328_s1, 256 }
  0x14   :  { %p204_p8 = scmp.ne.s32.totalorder %s328_s1, %s203_s28  ;;  %p207_p9 = scmp.lt.u32.totalorder %s203_s28, %s328_s1 }
  0x16   :  { %p209_p10 = pnand %p207_p9, %p204_p8 }
  0x18   :  { %212 = shalt.err (!%p209_p10)
}
  0x19   :  { %s213_s6 = scalar_lea.vmem %s281_s15, 256  ;;  %p218_p12 = scmp.lt.s32.totalorder %s281_s15, %s281_s15 }
  0x1a   :  { %p214_p11 = scmp.ne.s32.totalorder %s281_s15, %s213_s6  ;;  %p219_p13 = scmp.lt.s32.totalorder %s213_s6, %s213_s6 }
  0x1c   :  { %p220_p0 = por %p219_p13, %p218_p12 }
  0x1e   :  { %p221_p1 = pnand %p220_p0, %p214_p11 }
  0x20   :  { %224 = shalt.err (!%p221_p1)
}
  0x21   :  { %s255_s0 = smov 128   ;;  %s256_s7 = smov 8  }
  0x22   :  { %32 = dma.hbm_to_vmem [thread:$0]  %s328_s1, 256, %s281_s15, [#allocation7], %s255_s0, %s255_s0, %s256_s7  }
  0x23   :  { %247 = dma.done.wait [#allocation4], 128  }
  0x24   :  { %248 = vsyncadd [#allocation4], 4294967168 }
  0x25   :  { %249 = dma.done.wait [#allocation7], 256  }
  0x26   :  { %250 = vsyncadd [#allocation7], 4294967040  ;;  %v257_v0 = vmov 0.0|0.0   ;;  %vm258_vm0 = vmmov 0   ;;  %v259_v1 = vmov 0.0   ;;  %v48_v2 = vld [vmem:[#allocation6] sm:$0xff] }
  0x27   :  { %168 = vmatprep.subr.bf16.mxu0 %v257_v0  ;;  %165 = vmatprep.mubr.msk.f32.mxu0 %vm258_vm0, %v259_v1  ;;  %v49_v3 = vld [vmem:[#allocation6 + $0x8] sm:$0xff]  ;;  %v47_v5 = vld [vmem:[#allocation3] sm:$0xff]  ;;  %vm50_vm1 = vcmask 130048   ;;  %s260_s1 = smov [#allocation8]  }
  0x28   :  { %v169_v4 = vpack.c.bf16 %v49_v3, %v48_v2  ;;  %v157_v6 = vld [vmem:[%s329_s2] ss:$0 sm:$0xff]  ;;  %s146_s12 = sshll.u32 %s260_s1, 4  ;;  %s147_s12 = int_to_ptr.vmem [resolvable:$true] %s146_s12 }
  0x29   :  { %s225_s13 = scalar_lea.vmem %s147_s12, 128  ;;  %p230_p3 = scmp.lt.s32.totalorder %s147_s12, %s147_s12 }
  0x2a   :  { %170 = vmatpush3.bf16.msra.mxu0 %v169_v4  ;;  %p226_p2 = scmp.ne.s32.totalorder %s147_s12, %s225_s13  ;;  %p231_p4 = scmp.lt.s32.totalorder %s225_s13, %s225_s13 }
  0x2c   :  { %p232_p5 = por %p231_p4, %p230_p3 }
  0x2d   :  { %166 = vmatmul.mubr.msk.f32.vlgmr.msra.gmra.mrb[0].mxu0 %vm50_vm1, %v47_v5 }
  0x2e   :  { %p233_p6 = pnand %p232_p5, %p226_p2 }
 0x100   :  { %v120_v7 = vpop.f32.mrb[0].mxu0 }
 0x101   :  { %v137_v8 = vadd.f32 %v157_v6, %v120_v7  ;;  %v167_v9 = vpop.f32.mrb[1].mxu0 }
 0x103   :  { %179 = vtanh.f32 %v137_v8 }
 0x10d   :  { %v180_v10 = vpop.eup %179 }
 0x10e   :  { %139 = vst [vmem:[#allocation8] sm:$0xff] %v180_v10 }
 0x10f   :  { %236 = shalt.err (!%p233_p6)
}
 0x110   :  { %s237_s2 = scalar_lea.hbm %s330_s3, 128 }
 0x111   :  { %p238_p7 = scmp.ne.s32.totalorder %s330_s3, %s237_s2  ;;  %p241_p8 = scmp.lt.u32.totalorder %s237_s2, %s330_s3 }
 0x113   :  { %p243_p9 = pnand %p241_p8, %p238_p7 }
 0x115   :  { %246 = shalt.err (!%p243_p9)
}
 0x116   :  { %149 = dma.vmem_to_hbm [thread:$0]  %s147_s12, 128, %s330_s3, [#allocation5]  }
 0x117   :  { %251 = dma.done.wait [#allocation5], 128  }
 0x118   :  { %252 = vsyncadd [#allocation5], 4294967168 }
 0x119   :  { %153 = vsyncpa [#allocation4], 1 }
 0x11a   :  { %154 = vsyncpa [#allocation7], 1 }
 0x11b   :  { %155 = vsyncpa [#allocation5], 1 }

</bundles_post_ra>
